<compile_context>
chip_gen: v6e
topology: v6e:2x2x1
jax: 0.10.0
libtpu: 0.0.40
codegen_flags: <defaults>
</compile_context>

<pallas_src>
import jax
import jax.numpy as jnp
from jax.experimental import pallas as pl
from jax.experimental.pallas import tpu as pltpu


# --------------------------------------------------------------------------
# Kernels
# --------------------------------------------------------------------------
def _rmsnorm_onepass_kernel(x_ref, w_ref, o_ref):
    # x_ref: (TB, F), w_ref: (1, F), o_ref: (TB, F)  -- F == full row (S*D)
    x = x_ref[...].astype(jnp.float32)
    f = x.shape[-1]
    sum_sq = jnp.sum(x * x, axis=-1, keepdims=True)         # (TB, 1) per-batch
    inv = jax.lax.rsqrt(sum_sq * (1.0 / f))                  # EUP rsqrt
    w = w_ref[...].astype(jnp.float32)
    o_ref[...] = (x * inv * w).astype(o_ref.dtype)


def _make_sumsq_kernel(f_total, chunk, need_mask):
    # Pass 1 of the chunked path: per-batch sum of squares over F-chunks.
    def kernel(x_ref, o_ref, acc_ref):
        c = pl.program_id(1)

        @pl.when(c == 0)
        def _():
            acc_ref[...] = jnp.zeros_like(acc_ref)

        x = x_ref[...].astype(jnp.float32)
        if need_mask:  # last chunk is partial: zero the padded columns
            col = c * chunk + jax.lax.broadcasted_iota(jnp.int32, x.shape, 1)
            x = jnp.where(col < f_total, x, 0.0)
        acc_ref[...] += jnp.sum(x * x, axis=-1, keepdims=True)

        @pl.when(c == pl.num_programs(1) - 1)
        def _():
            o_ref[...] = acc_ref[...]

    return kernel


def _make_scale_kernel(f_total):
    # Pass 2 of the chunked path: out = x * rsqrt(sum_sq/F) * scale.
    inv_f = 1.0 / float(f_total)

    def kernel(x_ref, w_ref, ss_ref, o_ref):
        x = x_ref[...].astype(jnp.float32)
        inv = jax.lax.rsqrt(ss_ref[...] * inv_f)             # (TB, 1)
        w = w_ref[...].astype(jnp.float32)
        o_ref[...] = (x * inv * w).astype(o_ref.dtype)

    return kernel


# --------------------------------------------------------------------------
# Wrapper
# --------------------------------------------------------------------------
def _choose_tb(batch, row_bytes, target_bytes):
    """Batch-tile size: multiple of 8 (sublane rule) or the full batch."""
    rows = max(1, int(target_bytes) // max(1, int(row_bytes)))
    if rows >= batch or batch <= 8:
        return batch
    tb = max(8, (rows // 8) * 8)
    return min(tb, batch)


def rmsnorm(x, scale, *,
            target_block_bytes=1 << 20,          # ~1 MiB blocks: >85% HBM roofline
            single_pass_max_row_bytes=2 << 20,   # rows bigger than this -> two-pass
            vmem_limit_bytes=32 * 1024 * 1024):
    """x: (B, S, D); scale: (S_max, D) with S_max >= S (sliced like PyTorch)."""
    B, S, D = x.shape
    F = S * D
    itemsize = x.dtype.itemsize

    # Lane-dense flatten (free reshapes; the reduction is over all S*D anyway).
    x2 = x.reshape(B, F)
    w2 = scale[:S, :].reshape(1, F)

    row_bytes = F * itemsize

    if row_bytes <= single_pass_max_row_bytes:
        # ---------------- single pass: one (TB, F) block per grid step --------
        tb = _choose_tb(B, row_bytes, target_block_bytes)
        nb = pl.cdiv(B, tb)
        out = pl.pallas_call(
            _rmsnorm_onepass_kernel,
            out_shape=jax.ShapeDtypeStruct((B, F), x.dtype),
            grid_spec=pltpu.PrefetchScalarGridSpec(
                num_scalar_prefetch=0,
                grid=(nb,),
                in_specs=[
                    pl.BlockSpec((tb, F), lambda b: (b, 0)),
                    pl.BlockSpec((1, F), lambda b: (0, 0)),   # resident scale
                ],
                out_specs=pl.BlockSpec((tb, F), lambda b: (b, 0)),
            ),
            compiler_params=pltpu.CompilerParams(
                dimension_semantics=("parallel",),
                vmem_limit_bytes=vmem_limit_bytes,
            ),
            cost_estimate=pl.CostEstimate(
                flops=3 * B * F,
                transcendentals=B,
                bytes_accessed=(2 * B * F + F) * itemsize,
            ),
        )(x2, w2)
        return out.reshape(B, S, D)

    # ---------------- two-pass chunked path (large S*D; v7x 64 MiB safe) ------
    tb = B if B <= 8 else 8
    chunk_target_bytes = max(512, target_block_bytes // tb)
    chunk = max(128, (chunk_target_bytes // itemsize // 128) * 128)
    chunk = min(chunk, F)
    nc = pl.cdiv(F, chunk)
    nb = pl.cdiv(B, tb)
    need_mask = (F % chunk) != 0

    # Pass 1: per-batch sum of squares, chunk axis is the reduction ("arbitrary").
    sumsq = pl.pallas_call(
        _make_sumsq_kernel(F, chunk, need_mask),
        out_shape=jax.ShapeDtypeStruct((B, 1), jnp.float32),
        grid_spec=pltpu.PrefetchScalarGridSpec(
            num_scalar_prefetch=0,
            grid=(nb, nc),
            in_specs=[pl.BlockSpec((tb, chunk), lambda b, c: (b, c))],
            out_specs=pl.BlockSpec((tb, 1), lambda b, c: (b, 0)),
            scratch_shapes=[pltpu.VMEM((tb, 1), jnp.float32)],
        ),
        compiler_params=pltpu.CompilerParams(
            dimension_semantics=("parallel", "arbitrary"),
            vmem_limit_bytes=vmem_limit_bytes,
        ),
        cost_estimate=pl.CostEstimate(
            flops=2 * B * F, transcendentals=0, bytes_accessed=B * F * itemsize),
    )(x2)

    # Pass 2: normalize + scale + write; both axes parallel (feeds both v7x TCs).
    out = pl.pallas_call(
        _make_scale_kernel(F),
        out_shape=jax.ShapeDtypeStruct((B, F), x.dtype),
        grid_spec=pltpu.PrefetchScalarGridSpec(
            num_scalar_prefetch=0,
            grid=(nb, nc),
            in_specs=[
                pl.BlockSpec((tb, chunk), lambda b, c: (b, c)),
                pl.BlockSpec((1, chunk), lambda b, c: (0, c)),
                pl.BlockSpec((tb, 1), lambda b, c: (b, 0)),
            ],
            out_specs=pl.BlockSpec((tb, chunk), lambda b, c: (b, c)),
        ),
        compiler_params=pltpu.CompilerParams(
            dimension_semantics=("parallel", "parallel"),
            vmem_limit_bytes=vmem_limit_bytes,
        ),
        cost_estimate=pl.CostEstimate(
            flops=2 * B * F + B,
            transcendentals=B,
            bytes_accessed=(2 * B * F + F) * itemsize,
        ),
    )(x2, w2, sumsq)
    return out.reshape(B, S, D)


# --------------------------------------------------------------------------
# Reference + test
# --------------------------------------------------------------------------
def _rmsnorm_ref(x, scale):
    B, S, D = x.shape
    xf = x.astype(jnp.float32)
    ff = jnp.sqrt(jnp.sum(xf * xf, axis=(1, 2))) * (S * D) ** -0.5
    out = scale[:S, :].astype(jnp.float32)[None] * (xf / ff[:, None, None])
    return out.astype(x.dtype)


if __name__ == "__main__":
    key = jax.random.PRNGKey(0)
    k1, k2, k3, k4 = jax.random.split(key, 4)

    # ---- Test 1: default single-pass, lane-dense flattened path -------------
    B, S, D = 2, 8, 32
    x = jax.random.normal(k1, (B, S, D), dtype=jnp.float32)
    scale = 1.0 + 0.1 * jax.random.normal(k2, (S, D), dtype=jnp.float32)
    ref = _rmsnorm_ref(x, scale)

    out = jax.block_until_ready(rmsnorm(x, scale))
    assert jnp.allclose(out, ref, atol=1e-5, rtol=1e-4), "single-pass mismatch"

    # ---- Test 2: force the two-pass chunked-reduction path ------------------
    out2 = jax.block_until_ready(
        rmsnorm(x, scale, single_pass_max_row_bytes=0, target_block_bytes=512))
    assert jnp.allclose(out2, ref, atol=1e-5, rtol=1e-4), "two-pass mismatch"

    # ---- Test 3: scale[:S] slicing + F not a multiple of 128 (mask path) ----
    B3, S3, D3, S_max = 2, 8, 40, 16
    x3 = jax.random.normal(k3, (B3, S3, D3), dtype=jnp.float32)
    scale3 = 1.0 + 0.1 * jax.random.normal(k4, (S_max, D3), dtype=jnp.float32)
    ref3 = _rmsnorm_ref(x3, scale3)

    out3 = jax.block_until_ready(rmsnorm(x3, scale3))
    assert jnp.allclose(out3, ref3, atol=1e-5, rtol=1e-4), "non-128 single-pass mismatch"

    out3b = jax.block_until_ready(
        rmsnorm(x3, scale3, single_pass_max_row_bytes=0, target_block_bytes=512))
    assert jnp.allclose(out3b, ref3, atol=1e-5, rtol=1e-4), "non-128 two-pass mismatch"

    print("KERNEL_OK")
</pallas_src>

<mosaic_0001>
module attributes {stable_mosaic.version = 11 : i64} {
  func.func @_rmsnorm_onepass_kernel(%arg0: i32, %arg1: memref<2x256xf32, #tpu.memory_space<vmem>>, %arg2: memref<1x256xf32, #tpu.memory_space<vmem>>, %arg3: memref<2x256xf32, #tpu.memory_space<vmem>>) attributes {dimension_semantics = [#tpu.dimension_semantics<parallel>], iteration_bounds = array<i64: 1>, scalar_prefetch = 0 : i64, scratch_operands = 0 : i64, tpu.core_type = #tpu.core_type<tc>, window_params = [{transform_indices = @transform_0, window_bounds = array<i64: 2, 256>}, {pipeline_mode = #tpu.pipeline_mode<synchronous>, transform_indices = @transform_1, window_bounds = array<i64: 1, 256>}, {transform_indices = @transform_2, window_bounds = array<i64: 2, 256>}]} {
    %c0 = arith.constant 0 : index
    %c0_0 = arith.constant 0 : index
    %0 = vector.load %arg1[%c0, %c0_0] : memref<2x256xf32, #tpu.memory_space<vmem>>, vector<2x256xf32>
    %1 = arith.mulf %0, %0 : vector<2x256xf32>
    %cst = arith.constant dense<0.000000e+00> : vector<2xf32>
    %2 = vector.multi_reduction <add>, %1, %cst [1] : vector<2x256xf32> to vector<2xf32>
    %3 = vector.shape_cast %2 : vector<2xf32> to vector<2x1xf32>
    %cst_1 = arith.constant 3.906250e-03 : f32
    %4 = vector.broadcast %cst_1 : f32 to vector<2x1xf32>
    %5 = arith.mulf %3, %4 : vector<2x1xf32>
    %6 = math.rsqrt %5 : vector<2x1xf32>
    %c0_2 = arith.constant 0 : index
    %c0_3 = arith.constant 0 : index
    %7 = vector.load %arg2[%c0_2, %c0_3] : memref<1x256xf32, #tpu.memory_space<vmem>>, vector<1x256xf32>
    %8 = vector.broadcast %6 : vector<2x1xf32> to vector<2x256xf32>
    %9 = arith.mulf %0, %8 : vector<2x256xf32>
    %10 = vector.broadcast %7 : vector<1x256xf32> to vector<2x256xf32>
    %11 = arith.mulf %9, %10 : vector<2x256xf32>
    %c0_4 = arith.constant 0 : index
    %c0_5 = arith.constant 0 : index
    %12 = vector.load %arg3[%c0_4, %c0_5] : memref<2x256xf32, #tpu.memory_space<vmem>>, vector<2x256xf32>
    tpu.vector_store %arg3[%c0_4, %c0_5], %11 {strides = array<i32>} : memref<2x256xf32, #tpu.memory_space<vmem>>, vector<2x256xf32>,
    return
  }
  func.func @transform_0(%arg0: i32) -> (i32, i32) {
    %c0_i32 = arith.constant 0 : i32
    %c0_i32_0 = arith.constant 0 : i32
    return %arg0, %c0_i32 : i32, i32
  }
  func.func @transform_1(%arg0: i32) -> (i32, i32) {
    %c0_i32 = arith.constant 0 : i32
    %c0_i32_0 = arith.constant 0 : i32
    %c0_i32_1 = arith.constant 0 : i32
    return %c0_i32, %c0_i32_0 : i32, i32
  }
  func.func @transform_2(%arg0: i32) -> (i32, i32) {
    %c0_i32 = arith.constant 0 : i32
    %c0_i32_0 = arith.constant 0 : i32
    return %arg0, %c0_i32 : i32, i32
  }
}

</mosaic_0001>

<bundles_post_ra>
// kernel: tpu_custom_call.1
= control target key start
LH: loop header
LB: loop body
LE: loop exit
PB: predicated region body
PF: predicated region fallthrough
CT: control target
= control target key end

     0   :  { %7 = vsyncpa [#allocation3], 0  ;;  %s206_s0 = inlined_call_operand.hbm [shape: f32[2,256], index: 0, kind: input, shape index: {}]   ;;  %s207_s1 = inlined_call_operand.hbm [shape: f32[1,256], index: 1, kind: input, shape index: {}]   ;;  %s208_s2 = inlined_call_operand.hbm [shape: f32[2,256], index: 2, kind: output, shape index: {}]  }
   0x1   :  { %8 = vsyncpa [#allocation6], 0 }
   0x2   :  { %9 = vsyncpa [#allocation4], 0  ;;  %s177_s9 = smov [#allocation2]   ;;  %s178_s11 = smov [#allocation5]  }
   0x3   :  { %s16_s10 = sshll.u32 %s177_s9, 4  ;;  %s26_s12 = sshll.u32 %s178_s11, 4  ;;  %s17_s10 = int_to_ptr.vmem [resolvable:$true] %s16_s10  ;;  %s27_s12 = int_to_ptr.vmem [resolvable:$true] %s26_s12 }
   0x4   :  { %s119_s13 = scalar_lea.vmem %s17_s10, 64  ;;  %p124_p1 = scmp.lt.s32.totalorder %s17_s10, %s17_s10 }
   0x5   :  { %p120_p0 = scmp.ne.s32.totalorder %s17_s10, %s119_s13  ;;  %p125_p2 = scmp.lt.s32.totalorder %s119_s13, %s119_s13 }
   0x7   :  { %p126_p3 = por %p125_p2, %p124_p1 }
   0x9   :  { %p127_p4 = pnand %p126_p3, %p120_p0 }
   0xb   :  { %130 = shalt.err (!%p127_p4)
}
   0xc   :  { %19 = dma.hbm_to_vmem [thread:$0]  %s206_s0, 64, %s17_s10, [#allocation3]  }
   0xd   :  { %s139_s16 = scalar_lea.vmem %s27_s12, 32  ;;  %p144_p6 = scmp.lt.s32.totalorder %s27_s12, %s27_s12 }
   0xe   :  { %p140_p5 = scmp.ne.s32.totalorder %s27_s12, %s139_s16  ;;  %p145_p7 = scmp.lt.s32.totalorder %s139_s16, %s139_s16 }
  0x10   :  { %p146_p8 = por %p145_p7, %p144_p6 }
  0x12   :  { %p147_p9 = pnand %p146_p8, %p140_p5 }
  0x14   :  { %150 = shalt.err (!%p147_p9)
}
  0x15   :  { %29 = dma.hbm_to_vmem [thread:$0]  %s207_s1, 32, %s27_s12, [#allocation6]  }
  0x16   :  { %171 = dma.done.wait [#allocation3], 64  }
  0x17   :  { %172 = vsyncadd [#allocation3], 4294967232 }
  0x18   :  { %173 = dma.done.wait [#allocation6], 32  }
  0x19   :  { %174 = vsyncadd [#allocation6], 4294967264  ;;  %v42_v0 = vlaneseq  ;;  %v179_v1 = vmov 1983009808   ;;  %v36_v6 = vld [vmem:[#allocation2] sm:$0xf] }
  0x1a   :  { %v40_v2 = vunpack.c.l.s4 %v179_v1  ;;  %v37_v7 = vmul.f32 %v36_v6, %v36_v6  ;;  %vm49_vm0 = vcmask 1041408   ;;  %v57_v13 = vld [vmem:[#allocation5] sm:$0x3]  ;;  %v180_v22 = vmov 269488144   ;;  %s181_s0 = smov [#allocation7]  }
  0x1b   :  { %v43_v3 = vshrl.u32 %v42_v0, 7  ;;  %v60_v23 = vunpack.c.l.s4 %v180_v22  ;;  %s94_s1 = sshll.u32 %s181_s0, 4  ;;  %s95_s1 = int_to_ptr.vmem [resolvable:$true] %s94_s1 }
  0x1c   :  { %v41_v4 = vunpack.c.0.s8 %v40_v2  ;;  %s151_s19 = scalar_lea.vmem %s95_s1, 64  ;;  %p156_p11 = scmp.lt.s32.totalorder %s95_s1, %s95_s1 }
  0x1d   :  { %v71_v14 = vsub.s32 0, %v43_v3  ;;  %v75_v15 = vsub.s32 1, %v43_v3  ;;  %v61_v24 = vunpack.c.0.s8 %v60_v23  ;;  %p152_p10 = scmp.ne.s32.totalorder %s95_s1, %s151_s19  ;;  %p157_p12 = scmp.lt.s32.totalorder %s151_s19, %s151_s19 }
  0x1e   :  { %v44_v5 = vsub.s32 %v41_v4, %v43_v3 }
  0x1f   :  { %v72_v16 = vrot.slane %v57_v13, %v71_v14  ;;  %v76_v17 = vrot.slane %v57_v13, %v75_v15  ;;  %v64_v25 = vsub.s32 %v61_v24, %v43_v3  ;;  %p158_p13 = por %p157_p12, %p156_p11 }
  0x20   :  { %v45_v8 = vrot.slane %v37_v7, %v44_v5 }
  0x21   :  { %v77_v18 = vcombine.low %v72_v16, %v76_v17  ;;  %p159_p0 = pnand %p158_p13, %p152_p10 }
  0x22   :  { %v46_v9 = vcombine.high %v45_v8, %v45_v8  ;;  %v50_v10 = vsel %vm49_vm0, %v45_v8, 0.0 }
  0x23   :  { %v84_v19 = vrot.slane %v77_v18, %v44_v5 }
  0x24   :  { %v51_v11 = vsel %vm49_vm0, %v46_v9, 0.0 }
  0x25   :  { %v52_v12 = vadd.f32 %v51_v11, %v50_v10 }
  0x27   :  { %53 = vadd.xlane.f32.xlu0 %v52_v12 }
  0xb0   :  { %v54_v20 = vpop.xlane.xlu0 %53 }
  0xb1   :  { %v55_v21 = vmul.f32 0.00390625, %v54_v20 }
  0xb3   :  { %109 = vrsqrt.f32 %v55_v21 }
  0xc0   :  { %v110_v26 = vpop.eup %109 }
  0xc1   :  { %v65_v27 = vrot.slane %v110_v26, %v64_v25 }
  0xc3   :  { %v67_v28 = vmul.f32 %v65_v27, %v36_v6 }
  0xc5   :  { %v86_v29 = vmul.f32 %v84_v19, %v67_v28 }
  0xc7   :  { %87 = vst [vmem:[#allocation7] sm:$0xf] %v86_v29 }
  0xc8   :  { %162 = shalt.err (!%p159_p0)
}
  0xc9   :  { %97 = dma.vmem_to_hbm [thread:$0]  %s95_s1, 64, %s208_s2, [#allocation4]  }
  0xca   :  { %175 = dma.done.wait [#allocation4], 64  }
  0xcb   :  { %176 = vsyncadd [#allocation4], 4294967232 }
  0xcc   :  { %101 = vsyncpa [#allocation3], 1 }
  0xcd   :  { %102 = vsyncpa [#allocation6], 1 }
  0xce   :  { %103 = vsyncpa [#allocation4], 1 }

</bundles_post_ra>
